<compile_context>
chip_gen: v5e
topology: v5e:2x2
jax: 0.10.0
libtpu: 0.0.40
codegen_flags: <defaults>
</compile_context>

<pallas_src>
import jax
import jax.numpy as jnp
import numpy as np
from jax.experimental import pallas as pl
from jax.experimental.pallas import tpu as pltpu

# ---- model hyper-params (small, consistent with the module's forward) ----
DIM = 32        # embedding dim
HEADS = 2
DIM_HEAD = 8
INNER = HEADS * DIM_HEAD          # 16
SCALE = DIM_HEAD ** (-0.5)
B = 2           # batch
M = 8           # number of tokens


def attention_kernel(z_ref, wqkv_ref, wout_ref, bout_ref, o_ref):
    b, m, d = z_ref.shape

    # --- fused QKV projection for all batches / tokens / heads in one MXU matmul ---
    z2 = z_ref[...].reshape(b * m, d)                               # (B*M, D)
    qkv = jnp.dot(z2, wqkv_ref[...],
                  preferred_element_type=jnp.float32)               # (B*M, 3*INNER)
    qkv = qkv.reshape(b, m, 3 * INNER)                              # (B, M, 3*INNER)

    wout = wout_ref[...]                                            # (INNER, D)
    acc = jnp.zeros((b * m, d), jnp.float32)

    # Static unroll over the 2 heads; score / AV matmuls are batched over B (single
    # batch-dim einsums, no explicit K transpose, no concat of head outputs).
    for h in range(HEADS):
        qs = h * DIM_HEAD
        ks = INNER + h * DIM_HEAD
        vs = 2 * INNER + h * DIM_HEAD
        qh = qkv[:, :, qs:qs + DIM_HEAD]                            # (B, M, Dh), scale pre-folded
        kh = qkv[:, :, ks:ks + DIM_HEAD]                            # (B, M, Dh)
        vh = qkv[:, :, vs:vs + DIM_HEAD]                            # (B, M, Dh)

        dots = jnp.einsum('bqd,bkd->bqk', qh, kh,
                          preferred_element_type=jnp.float32)       # (B, M, M)
        dots = dots - jnp.max(dots, axis=-1, keepdims=True)
        p = jnp.exp(dots)
        attn = p * pl.reciprocal(jnp.sum(p, axis=-1, keepdims=True), approx=True)

        out_h = jnp.einsum('bqk,bkd->bqd', attn, vh,
                           preferred_element_type=jnp.float32)      # (B, M, Dh)
        # Fold this head's slice of the output projection (== concat(heads) @ w_out).
        acc = acc + jnp.dot(out_h.reshape(b * m, DIM_HEAD),
                            wout[qs:qs + DIM_HEAD, :],
                            preferred_element_type=jnp.float32)     # (B*M, D)

    proj = acc + bout_ref[...]                                      # bias broadcast (1, D)
    o_ref[...] = proj.reshape(b, m, d).astype(o_ref.dtype)


def attention_pallas(z, w_qkv_scaled, w_out, b_out):
    b, m, d = z.shape
    return pl.pallas_call(
        attention_kernel,
        out_shape=jax.ShapeDtypeStruct((b, m, d), z.dtype),
        grid_spec=pltpu.PrefetchScalarGridSpec(
            num_scalar_prefetch=0,
            grid=(1,),                                              # single step: everything fits VMEM
            in_specs=[
                pl.BlockSpec((b, m, d), lambda i: (0, 0, 0)),        # z (full)
                pl.BlockSpec((d, 3 * INNER), lambda i: (0, 0)),      # w_qkv (full, Q cols pre-scaled)
                pl.BlockSpec((INNER, d), lambda i: (0, 0)),          # w_out (full)
                pl.BlockSpec((1, d), lambda i: (0, 0)),              # b_out (full)
            ],
            out_specs=pl.BlockSpec((b, m, d), lambda i: (0, 0, 0)),
        ),
        compiler_params=pltpu.CompilerParams(
            dimension_semantics=("arbitrary",)),
    )(z, w_qkv_scaled, w_out, b_out)


def attention_ref(z, w_qkv, w_out, b_out):
    # pure-JAX reference mirroring the PyTorch forward (eval mode), unscaled weights.
    b, m, _ = z.shape
    qkv = z @ w_qkv
    q, k, v = jnp.split(qkv, 3, axis=-1)

    def heads(x):
        return x.reshape(b, m, HEADS, DIM_HEAD).transpose(0, 2, 1, 3)

    q, k, v = heads(q), heads(k), heads(v)
    dots = jnp.einsum("bhqd,bhkd->bhqk", q, k) * SCALE
    attn = jax.nn.softmax(dots, axis=-1)
    out = jnp.einsum("bhqk,bhkd->bhqd", attn, v)
    out = out.transpose(0, 2, 1, 3).reshape(b, m, INNER)
    return out @ w_out + b_out[0]


if __name__ == "__main__":
    key = jax.random.PRNGKey(0)
    kz, kqkv, kwo, kbo = jax.random.split(key, 4)

    z = jax.random.normal(kz, (B, M, DIM), dtype=jnp.float32)
    # deterministic synthetic parameters (shapes per nn.Linear in __init__)
    w_qkv = jax.random.normal(kqkv, (DIM, 3 * INNER), dtype=jnp.float32) * 0.1
    w_out = jax.random.normal(kwo, (INNER, DIM), dtype=jnp.float32) * 0.1
    b_out = jax.random.normal(kbo, (1, DIM), dtype=jnp.float32) * 0.1

    # One-time parameter fold: softmax scale into the Q columns of the QKV weight.
    w_qkv_scaled = w_qkv.at[:, :INNER].multiply(SCALE)

    out = attention_pallas(z, w_qkv_scaled, w_out, b_out)
    out = jax.block_until_ready(out)

    ref = attention_ref(z, w_qkv, w_out, b_out)
    # Tolerance relaxed vs 1e-5 because the kernel uses the EUP approximate reciprocal
    # (vrcp) for the softmax normalization.
    np.testing.assert_allclose(np.asarray(out), np.asarray(ref), rtol=1e-2, atol=1e-2)

    print("KERNEL_OK")
</pallas_src>

<mosaic_0001>
module attributes {stable_mosaic.version = 11 : i64} {
  func.func @attention_kernel(%arg0: i32, %arg1: memref<2x8x32xf32, #tpu.memory_space<vmem>>, %arg2: memref<32x48xf32, #tpu.memory_space<vmem>>, %arg3: memref<16x32xf32, #tpu.memory_space<vmem>>, %arg4: memref<1x32xf32, #tpu.memory_space<vmem>>, %arg5: memref<2x8x32xf32, #tpu.memory_space<vmem>>) attributes {dimension_semantics = [#tpu.dimension_semantics<arbitrary>], iteration_bounds = array<i64: 1>, scalar_prefetch = 0 : i64, scratch_operands = 0 : i64, tpu.core_type = #tpu.core_type<tc>, window_params = [{pipeline_mode = #tpu.pipeline_mode<synchronous>, transform_indices = @transform_0, window_bounds = array<i64: 2, 8, 32>}, {pipeline_mode = #tpu.pipeline_mode<synchronous>, transform_indices = @transform_1, window_bounds = array<i64: 32, 48>}, {pipeline_mode = #tpu.pipeline_mode<synchronous>, transform_indices = @transform_2, window_bounds = array<i64: 16, 32>}, {pipeline_mode = #tpu.pipeline_mode<synchronous>, transform_indices = @transform_3, window_bounds = array<i64: 1, 32>}, {pipeline_mode = #tpu.pipeline_mode<synchronous>, transform_indices = @transform_4, window_bounds = array<i64: 2, 8, 32>}]} {
    %c0 = arith.constant 0 : index
    %c0_0 = arith.constant 0 : index
    %c0_1 = arith.constant 0 : index
    %0 = vector.load %arg1[%c0, %c0_0, %c0_1] : memref<2x8x32xf32, #tpu.memory_space<vmem>>, vector<2x8x32xf32>
    %1 = vector.shape_cast %0 : vector<2x8x32xf32> to vector<16x32xf32>
    %c0_2 = arith.constant 0 : index
    %c0_3 = arith.constant 0 : index
    %2 = vector.load %arg2[%c0_2, %c0_3] : memref<32x48xf32, #tpu.memory_space<vmem>>, vector<32x48xf32>
    %cst = arith.constant dense<0.000000e+00> : vector<16x48xf32>
    %3 = tpu.matmul %1, %2, %cst {dimension_numbers = #tpu.dot_dimension_numbers<[1], [0], [0], [1], [0, 0, 1, 1], [], []>} : vector<16x32xf32>, vector<32x48xf32>, vector<16x48xf32> -> vector<16x48xf32>
    %4 = vector.shape_cast %3 : vector<16x48xf32> to vector<2x8x48xf32>
    %c0_4 = arith.constant 0 : index
    %c0_5 = arith.constant 0 : index
    %5 = vector.load %arg3[%c0_4, %c0_5] : memref<16x32xf32, #tpu.memory_space<vmem>>, vector<16x32xf32>
    %cst_6 = arith.constant 0.000000e+00 : f32
    %6 = vector.broadcast %cst_6 : f32 to vector<16x32xf32>
    %7 = vector.extract_strided_slice %4 {offsets = [0, 0, 0], sizes = [2, 8, 8], strides = [1, 1, 1]} : vector<2x8x48xf32> to vector<2x8x8xf32>
    %8 = vector.extract_strided_slice %4 {offsets = [0, 0, 16], sizes = [2, 8, 8], strides = [1, 1, 1]} : vector<2x8x48xf32> to vector<2x8x8xf32>
    %9 = vector.extract_strided_slice %4 {offsets = [0, 0, 32], sizes = [2, 8, 8], strides = [1, 1, 1]} : vector<2x8x48xf32> to vector<2x8x8xf32>
    "tpu.trace_start"() <{level = 10 : i32, message = "bqd,bkd->bqk"}> : () -> ()
    %cst_7 = arith.constant dense<0.000000e+00> : vector<2x8x8xf32>
    %10 = tpu.matmul %7, %8, %cst_7 {dimension_numbers = #tpu.dot_dimension_numbers<[2], [2], [1], [1], [0, 0, 0, 1, 1, 1], [0], [0]>} : vector<2x8x8xf32>, vector<2x8x8xf32>, vector<2x8x8xf32> -> vector<2x8x8xf32>
    "tpu.trace_stop"() : () -> ()
    %cst_8 = arith.constant dense<0xFF800000> : vector<2x8xf32>
    %11 = vector.multi_reduction <maximumf>, %10, %cst_8 [2] : vector<2x8x8xf32> to vector<2x8xf32>
    %12 = vector.shape_cast %11 : vector<2x8xf32> to vector<2x8x1xf32>
    %13 = vector.broadcast %12 : vector<2x8x1xf32> to vector<2x8x8xf32>
    %14 = arith.subf %10, %13 : vector<2x8x8xf32>
    %15 = math.exp %14 : vector<2x8x8xf32>
    %cst_9 = arith.constant dense<0.000000e+00> : vector<2x8xf32>
    %16 = vector.multi_reduction <add>, %15, %cst_9 [2] : vector<2x8x8xf32> to vector<2x8xf32>
    %17 = vector.shape_cast %16 : vector<2x8xf32> to vector<2x8x1xf32>
    %18 = tpu.reciprocal %17 {approx = true} : vector<2x8x1xf32> -> vector<2x8x1xf32>
    %19 = vector.broadcast %18 : vector<2x8x1xf32> to vector<2x8x8xf32>
    %20 = arith.mulf %15, %19 : vector<2x8x8xf32>
    "tpu.trace_start"() <{level = 10 : i32, message = "bqk,bkd->bqd"}> : () -> ()
    %cst_10 = arith.constant dense<0.000000e+00> : vector<2x8x8xf32>
    %21 = tpu.matmul %20, %9, %cst_10 {dimension_numbers = #tpu.dot_dimension_numbers<[2], [1], [1], [2], [0, 0, 0, 1, 1, 2], [0], [0]>} : vector<2x8x8xf32>, vector<2x8x8xf32>, vector<2x8x8xf32> -> vector<2x8x8xf32>
    "tpu.trace_stop"() : () -> ()
    %22 = vector.shape_cast %21 : vector<2x8x8xf32> to vector<16x8xf32>
    %23 = vector.extract_strided_slice %5 {offsets = [0, 0], sizes = [8, 32], strides = [1, 1]} : vector<16x32xf32> to vector<8x32xf32>
    %cst_11 = arith.constant dense<0.000000e+00> : vector<16x32xf32>
    %24 = tpu.matmul %22, %23, %cst_11 {dimension_numbers = #tpu.dot_dimension_numbers<[1], [0], [0], [1], [0, 0, 1, 1], [], []>} : vector<16x8xf32>, vector<8x32xf32>, vector<16x32xf32> -> vector<16x32xf32>
    %25 = arith.addf %6, %24 : vector<16x32xf32>
    %26 = vector.extract_strided_slice %4 {offsets = [0, 0, 8], sizes = [2, 8, 8], strides = [1, 1, 1]} : vector<2x8x48xf32> to vector<2x8x8xf32>
    %27 = vector.extract_strided_slice %4 {offsets = [0, 0, 24], sizes = [2, 8, 8], strides = [1, 1, 1]} : vector<2x8x48xf32> to vector<2x8x8xf32>
    %28 = vector.extract_strided_slice %4 {offsets = [0, 0, 40], sizes = [2, 8, 8], strides = [1, 1, 1]} : vector<2x8x48xf32> to vector<2x8x8xf32>
    "tpu.trace_start"() <{level = 10 : i32, message = "bqd,bkd->bqk"}> : () -> ()
    %cst_12 = arith.constant dense<0.000000e+00> : vector<2x8x8xf32>
    %29 = tpu.matmul %26, %27, %cst_12 {dimension_numbers = #tpu.dot_dimension_numbers<[2], [2], [1], [1], [0, 0, 0, 1, 1, 1], [0], [0]>} : vector<2x8x8xf32>, vector<2x8x8xf32>, vector<2x8x8xf32> -> vector<2x8x8xf32>
    "tpu.trace_stop"() : () -> ()
    %cst_13 = arith.constant dense<0xFF800000> : vector<2x8xf32>
    %30 = vector.multi_reduction <maximumf>, %29, %cst_13 [2] : vector<2x8x8xf32> to vector<2x8xf32>
    %31 = vector.shape_cast %30 : vector<2x8xf32> to vector<2x8x1xf32>
    %32 = vector.broadcast %31 : vector<2x8x1xf32> to vector<2x8x8xf32>
    %33 = arith.subf %29, %32 : vector<2x8x8xf32>
    %34 = math.exp %33 : vector<2x8x8xf32>
    %cst_14 = arith.constant dense<0.000000e+00> : vector<2x8xf32>
    %35 = vector.multi_reduction <add>, %34, %cst_14 [2] : vector<2x8x8xf32> to vector<2x8xf32>
    %36 = vector.shape_cast %35 : vector<2x8xf32> to vector<2x8x1xf32>
    %37 = tpu.reciprocal %36 {approx = true} : vector<2x8x1xf32> -> vector<2x8x1xf32>
    %38 = vector.broadcast %37 : vector<2x8x1xf32> to vector<2x8x8xf32>
    %39 = arith.mulf %34, %38 : vector<2x8x8xf32>
    "tpu.trace_start"() <{level = 10 : i32, message = "bqk,bkd->bqd"}> : () -> ()
    %cst_15 = arith.constant dense<0.000000e+00> : vector<2x8x8xf32>
    %40 = tpu.matmul %39, %28, %cst_15 {dimension_numbers = #tpu.dot_dimension_numbers<[2], [1], [1], [2], [0, 0, 0, 1, 1, 2], [0], [0]>} : vector<2x8x8xf32>, vector<2x8x8xf32>, vector<2x8x8xf32> -> vector<2x8x8xf32>
    "tpu.trace_stop"() : () -> ()
    %41 = vector.shape_cast %40 : vector<2x8x8xf32> to vector<16x8xf32>
    %42 = vector.extract_strided_slice %5 {offsets = [8, 0], sizes = [8, 32], strides = [1, 1]} : vector<16x32xf32> to vector<8x32xf32>
    %cst_16 = arith.constant dense<0.000000e+00> : vector<16x32xf32>
    %43 = tpu.matmul %41, %42, %cst_16 {dimension_numbers = #tpu.dot_dimension_numbers<[1], [0], [0], [1], [0, 0, 1, 1], [], []>} : vector<16x8xf32>, vector<8x32xf32>, vector<16x32xf32> -> vector<16x32xf32>
    %44 = arith.addf %25, %43 : vector<16x32xf32>
    %c0_17 = arith.constant 0 : index
    %c0_18 = arith.constant 0 : index
    %45 = vector.load %arg4[%c0_17, %c0_18] : memref<1x32xf32, #tpu.memory_space<vmem>>, vector<1x32xf32>
    %46 = vector.broadcast %45 : vector<1x32xf32> to vector<16x32xf32>
    %47 = arith.addf %44, %46 : vector<16x32xf32>
    %48 = vector.shape_cast %47 : vector<16x32xf32> to vector<2x8x32xf32>
    %c0_19 = arith.constant 0 : index
    %c0_20 = arith.constant 0 : index
    %c0_21 = arith.constant 0 : index
    %49 = vector.load %arg5[%c0_19, %c0_20, %c0_21] : memref<2x8x32xf32, #tpu.memory_space<vmem>>, vector<2x8x32xf32>
    tpu.vector_store %arg5[%c0_19, %c0_20, %c0_21], %48 {strides = array<i32>} : memref<2x8x32xf32, #tpu.memory_space<vmem>>, vector<2x8x32xf32>,
    return
  }
  func.func @transform_0(%arg0: i32) -> (i32, i32, i32) {
    %c0_i32 = arith.constant 0 : i32
    %c0_i32_0 = arith.constant 0 : i32
    %c0_i32_1 = arith.constant 0 : i32
    %c0_i32_2 = arith.constant 0 : i32
    return %c0_i32, %c0_i32_0, %c0_i32_1 : i32, i32, i32
  }
  func.func @transform_1(%arg0: i32) -> (i32, i32) {
    %c0_i32 = arith.constant 0 : i32
    %c0_i32_0 = arith.constant 0 : i32
    %c0_i32_1 = arith.constant 0 : i32
    return %c0_i32, %c0_i32_0 : i32, i32
  }
  func.func @transform_2(%arg0: i32) -> (i32, i32) {
    %c0_i32 = arith.constant 0 : i32
    %c0_i32_0 = arith.constant 0 : i32
    %c0_i32_1 = arith.constant 0 : i32
    return %c0_i32, %c0_i32_0 : i32, i32
  }
  func.func @transform_3(%arg0: i32) -> (i32, i32) {
    %c0_i32 = arith.constant 0 : i32
    %c0_i32_0 = arith.constant 0 : i32
    %c0_i32_1 = arith.constant 0 : i32
    return %c0_i32, %c0_i32_0 : i32, i32
  }
  func.func @transform_4(%arg0: i32) -> (i32, i32, i32) {
    %c0_i32 = arith.constant 0 : i32
    %c0_i32_0 = arith.constant 0 : i32
    %c0_i32_1 = arith.constant 0 : i32
    %c0_i32_2 = arith.constant 0 : i32
    return %c0_i32, %c0_i32_0, %c0_i32_1 : i32, i32, i32
  }
}

</mosaic_0001>

<bundles_post_ra>
// kernel: tpu_custom_call.1
= control target key start
LH: loop header
LB: loop body
LE: loop exit
PB: predicated region body
PF: predicated region fallthrough
CT: control target
= control target key end

     0   :  { %9 = vsyncpa [#allocation3], 0  ;;  %s709_s0 = inlined_call_operand.hbm [shape: f32[2,8,32], index: 0, kind: input, shape index: {}]   ;;  %s710_s1 = inlined_call_operand.hbm [shape: f32[32,48], index: 1, kind: input, shape index: {}]   ;;  %s711_s2 = inlined_call_operand.hbm [shape: f32[16,32], index: 2, kind: input, shape index: {}]   ;;  %s712_s3 = inlined_call_operand.vmem [shape: f32[1,32], index: 3, kind: input, shape index: {}]   ;;  %s713_s4 = inlined_call_operand.hbm [shape: f32[2,8,32], index: 4, kind: output, shape index: {}]  }
   0x1   :  { %10 = vsyncpa [#allocation6], 0 }
   0x2   :  { %11 = vsyncpa [#allocation4], 0  ;;  %s29_s17 = sshll.u32 %s710_s1, 4  ;;  %s602_s18 = smov [#allocation5]   ;;  %s30_s17 = int_to_ptr.hbm [resolvable:$true] %s29_s17 }
   0x3   :  { %s31_s19 = sshll.u32 %s602_s18, 4  ;;  %s16_s22 = sshll.u32 %s709_s0, 4  ;;  %s32_s19 = int_to_ptr.vmem [resolvable:$true] %s31_s19  ;;  %s17_s22 = int_to_ptr.hbm [resolvable:$true] %s16_s22 }
   0x4   :  { %s603_s23 = smov 128   ;;  %s604_s24 = smov 8  }
   0x5   :  { %37 = dma.hbm_to_vmem [thread:$0]  %s30_s17, 512, %s32_s19, [#allocation6], %s603_s23, %s603_s23, %s604_s24  }
   0x6   :  { %s605_s25 = smov [#allocation2]   ;;  %s42_s1 = sshll.u32 %s711_s2, 4  ;;  %s43_s1 = int_to_ptr.hbm [resolvable:$true] %s42_s1 }
   0x7   :  { %s18_s26 = sshll.u32 %s605_s25, 4  ;;  %s606_s0 = smov [#allocation7]   ;;  %s19_s26 = int_to_ptr.vmem [resolvable:$true] %s18_s26 }
   0x8   :  { %24 = dma.hbm_to_vmem [thread:$0]  %s17_s22, 256, %s19_s26, [#allocation3], %s603_s23, %s603_s23, %s604_s24  }
   0x9   :  { %s44_s29 = sshll.u32 %s606_s0, 4  ;;  %s45_s29 = int_to_ptr.vmem [resolvable:$true] %s44_s29 }
   0xa   :  { %50 = dma.hbm_to_vmem [thread:$0]  %s43_s1, 256, %s45_s29, [#allocation6], %s603_s23, %s603_s23, %s604_s24  }
   0xb   :  { %596 = dma.done.wait [#allocation3], 256  }
   0xc   :  { %597 = vsyncadd [#allocation3], 4294967040 }
   0xd   :  { %598 = dma.done.wait [#allocation6], 768  }
   0xe   :  { %599 = vsyncadd [#allocation6], 4294966528  ;;  %v70_v0 = vld [vmem:[#allocation5 + $0x18] sm:$0xff]  ;;  %v69_v1 = vld [vmem:[#allocation5 + $0x10] sm:$0xff]  ;;  %vm71_vm0 = vcmask 261120   ;;  %s607_s2 = smov 104  }
   0xf   :  { %90 = vmatpush.msra.mxu0 %v70_v0  ;;  %v68_v2 = vld [vmem:[#allocation5 + $0x8] sm:$0xff]  ;;  %v67_v3 = vld [vmem:[#allocation5] sm:$0xff]  ;;  %v65_v4 = vld [vmem:[#allocation2] sm:$0xff]  ;;  %s608_s30 = smov 112   ;;  %s609_s5 = smov 120   ;;  %vm106_vm1 = vcmask 64512  }
  0x10   :  { %v66_v5 = vld [vmem:[#allocation2 + $0x8] sm:$0xff]  ;;  %s610_s6 = smov 96   ;;  %s611_s7 = smov 88   ;;  %v101_v60 = vld [vmem:[#allocation7] sm:$0xff]  ;;  %v102_v61 = vld [vmem:[#allocation7 + $0x8] sm:$0xff] }
  0x11   :  { %91 = vmatpush.msra.mxu0 %v69_v1  ;;  %s612_s10 = smov [#allocation8]   ;;  %s434_s14 = sshll.u32 %s713_s4, 4  ;;  %s435_s14 = int_to_ptr.hbm [resolvable:$true] %s434_s14 }
  0x12   :  { %s432_s11 = sshll.u32 %s612_s10, 4  ;;  %s433_s11 = int_to_ptr.vmem [resolvable:$true] %s432_s11 }
  0x13   :  { %92 = vmatpush.msra.mxu0 %v68_v2  ;;  %v483_v2 = vld [vmem:[%s712_s3] ss:$0 sm:$0xff] }
  0x15   :  { %93 = vmatpush.msra.mxu0 %v67_v3 }
  0x16   :  { %448 = vmatmul.msk.f32.vlgmr.msra.gmra.mxu0 %vm71_vm0, %v65_v4 }
  0x17   :  { %412 = vmatpush.msrb.mxu0 %v101_v60 }
  0x1e   :  { %449 = vmatmul.msk.f32.gmra.mxu0 %vm71_vm0, %v66_v5 }
  0x93   :  { %v658_v6 = vpop.f32.mrf.mxu0 }
  0x94   :  { %234 = vrot.lane.b32.xlu1 %v658_v6, %s607_s2  ;;  %104 = vrot.lane.b32.xlu0 %v658_v6, %s608_s30 }
  0x9b   :  { %v662_v7 = vpop.f32.mrf.mxu0 }
  0x9c   :  { %232 = vrot.lane.b32.xlu1 %v658_v6, %s609_s5  ;;  %262 = vrot.lane.b32.xlu2 %v662_v7, %s607_s2  ;;  %v478_v22 = vpack.i.bf16 %v662_v7, %v658_v6 }
  0x9d   :  { %132 = vrot.lane.b32.xlu0 %v662_v7, %s608_s30 }
  0xa4   :  { %260 = vrot.lane.b32.xlu2 %v662_v7, %s609_s5 }
  0xf6   :  { %v263_v11 = vpop.permute.xlu2 %262 }
  0xfe   :  { %v261_v13 = vpop.permute.xlu2 %260 }
 0x106   :  { %v235_v8 = vpop.permute.xlu1 %234  ;;  %v105_v9 = vpop.permute.xlu0 %104 }
 0x107   :  { %450 = vmatpush.xpose.msk.msra.mxu1 %vm106_vm1, %v105_v9 }
 0x10a   :  { %451 = vmatmul.msk.f32.vlgmr.msra.gmra.mxu1 %vm106_vm1, %v658_v6 }
 0x10b   :  { %456 = vmatpush.xpose.msk.msrb.mxu1 %vm106_vm1, %v235_v8 }
 0x10e   :  { %v233_v12 = vpop.permute.xlu1 %232 }
 0x10f   :  { %v133_v10 = vpop.permute.xlu0 %132 }
 0x110   :  { %452 = vmatpush.xpose.msk.msra.mxu2 %vm106_vm1, %v133_v10 }
 0x112   :  { %457 = vmatmul.msk.f32.vlgmr.msrb.gmra.mxu1 %vm106_vm1, %v233_v12 }
 0x113   :  { %453 = vmatmul.msk.f32.vlgmr.msra.gmra.mxu2 %vm106_vm1, %v662_v7 }
 0x114   :  { %458 = vmatpush.xpose.msk.msrb.mxu2 %vm106_vm1, %v263_v11 }
 0x118   :  { %383 = vmatpush.msra.mxu2 %v102_v61 }
 0x11b   :  { %459 = vmatmul.msk.f32.vlgmr.msrb.gmra.mxu2 %vm106_vm1, %v261_v13 }
 0x187   :  { %v128_v14 = vpop.f32.mrf.mxu1 }
 0x188   :  { %v158_v15 = vsel %vm106_vm1, %v128_v14, -inf }
 0x189   :  { %159 = vmax.xlane.f32.xlu0 %v158_v15 }
 0x18f   :  { %v257_v16 = vpop.f32.mrf.mxu1 }
 0x190   :  { %v288_v17 = vsel %vm106_vm1, %v257_v16, -inf }
 0x191   :  { %289 = vmax.xlane.f32.xlu2 %v288_v17 }
 0x196   :  { %v155_v18 = vpop.f32.mrf.mxu2 }
 0x197   :  { %v161_v19 = vsel %vm106_vm1, %v155_v18, -inf }
 0x198   :  { %162 = vmax.xlane.f32.xlu1 %v161_v19 }
 0x19e   :  { %v285_v20 = vpop.f32.mrf.mxu2 }
 0x19f   :  { %v291_v21 = vsel %vm106_vm1, %v285_v20, -inf }
 0x1a0   :  { %292 = vmax.xlane.f32.xlu2 %v291_v21 }
 0x1b8   :  { %479 = vrot.lane.b32.xlu2 %v478_v22, %s610_s6 }
 0x1fc   :  { %v160_v23 = vpop.xlane.xlu0 %159 }
 0x1fd   :  { %v164_v24 = vsub.f32 %v128_v14, %v160_v23 }
 0x1ff   :  { %v166_v25 = vmul.f32 1.442695, %v164_v24 }
 0x201   :  { %484 = vpow2.f32 %v166_v25 }
 0x204   :  { %v290_v26 = vpop.xlane.xlu2 %289 }
 0x205   :  { %v294_v27 = vsub.f32 %v257_v16, %v290_v26 }
 0x207   :  { %v485_v28 = vpop.eup %484  ;;  %v296_v29 = vmul.f32 1.442695, %v294_v27 }
 0x208   :  { %v170_v30 = vsel %vm106_vm1, %v485_v28, 0.0 }
 0x209   :  { %486 = vpow2.f32 %v296_v29  ;;  %171 = vadd.xlane.f32.xlu0 %v170_v30 }
 0x20b   :  { %v163_v31 = vpop.xlane.xlu1 %162 }
 0x20c   :  { %v165_v32 = vsub.f32 %v155_v18, %v163_v31 }
 0x20e   :  { %v168_v33 = vmul.f32 1.442695, %v165_v32 }
 0x20f   :  { %v487_v34 = vpop.eup %486 }
 0x210   :  { %488 = vpow2.f32 %v168_v33  ;;  %v300_v35 = vsel %vm106_vm1, %v487_v34, 0.0 }
 0x211   :  { %301 = vadd.xlane.f32.xlu0 %v300_v35 }
 0x213   :  { %v293_v36 = vpop.xlane.xlu2 %292 }
 0x214   :  { %v295_v37 = vsub.f32 %v285_v20, %v293_v36 }
 0x216   :  { %v489_v38 = vpop.eup %488  ;;  %v298_v39 = vmul.f32 1.442695, %v295_v37 }
 0x217   :  { %v173_v40 = vsel %vm106_vm1, %v489_v38, 0.0 }
 0x218   :  { %490 = vpow2.f32 %v298_v39  ;;  %174 = vadd.xlane.f32.xlu1 %v173_v40 }
 0x21b   :  { %v480_v41 = vpop.permute.xlu2 %479 }
 0x21c   :  { %v482_v42 = vunpack.i.h.bf16 %v480_v41  ;;  %v481_v43 = vunpack.i.l.bf16 %v480_v41 }
 0x21e   :  { %v491_v44 = vpop.eup %490  ;;  %201 = vmatpush.msra.mxu3 %v481_v43 }
 0x21f   :  { %v303_v45 = vsel %vm106_vm1, %v491_v44, 0.0 }
 0x220   :  { %227 = vmatpush.msrb.mxu3 %v482_v42  ;;  %304 = vadd.xlane.f32.xlu0 %v303_v45 }
 0x231   :  { %310 = vrot.lane.b32.xlu1 %v658_v6, %s611_s7 }
 0x234   :  { %336 = vrot.lane.b32.xlu0 %v662_v7, %s611_s7 }
 0x27c   :  { %v172_v46 = vpop.xlane.xlu0 %171 }
 0x27d   :  { %492 = vrcp.f32 %v172_v46 }
 0x283   :  { %v493_v47 = vpop.eup %492 }
 0x284   :  { %v178_v48 = vmul.f32 %v493_v47, %v485_v28  ;;  %v302_v51 = vpop.xlane.xlu0 %301 }
 0x286   :  { %454 = vmatmul.msk.f32.vlgmr.msra.gmra.mxu3 %vm106_vm1, %v178_v48 }
 0x28b   :  { %v175_v49 = vpop.xlane.xlu1 %174 }
 0x28c   :  { %494 = vrcp.f32 %v175_v49 }
 0x28d   :  { %496 = vrcp.f32 %v302_v51 }
 0x292   :  { %v495_v50 = vpop.eup %494 }
 0x293   :  { %v179_v52 = vmul.f32 %v495_v50, %v489_v38  ;;  %v305_v53 = vpop.xlane.xlu0 %304  ;;  %v497_v54 = vpop.eup %496 }
 0x294   :  { %498 = vrcp.f32 %v305_v53  ;;  %v308_v56 = vmul.f32 %v497_v54, %v487_v34 }
 0x295   :  { %455 = vmatmul.msk.f32.vlgmr.msrb.gmra.mxu3 %vm106_vm1, %v179_v52 }
 0x29a   :  { %v499_v55 = vpop.eup %498 }
 0x29b   :  { %v309_v58 = vmul.f32 %v499_v55, %v491_v44 }
 0x2a3   :  { %v311_v57 = vpop.permute.xlu1 %310 }
 0x2a4   :  { %331 = vmatpush.msra.mxu3 %v311_v57 }
 0x2a5   :  { %460 = vmatmul.msk.f32.vlgmr.msra.gmra.mxu3 %vm106_vm1, %v308_v56 }
 0x2a6   :  { %v337_v59 = vpop.permute.xlu0 %336  ;;  %466 = vmatpush.msrb.mxu3 %v101_v60 }
 0x2a7   :  { %357 = vmatpush.msra.mxu1 %v337_v59 }
 0x2a8   :  { %461 = vmatmul.msk.f32.vlgmr.msra.gmra.mxu1 %vm106_vm1, %v309_v58 }
 0x309   :  { %v203_v62 = vpop.f32.mrf.mxu3 }
 0x30a   :  { %464 = vmatmul.msk.f32.vlgmr.msrb.gmra.mxu0 %vm106_vm1, %v203_v62 }
 0x318   :  { %v229_v63 = vpop.f32.mrf.mxu3 }
 0x319   :  { %465 = vmatmul.msk.f32.vlgmr.msrb.gmra.mxu3 %vm106_vm1, %v229_v63 }
 0x325   :  { %v359_v1 = vpop.f32.mrf.mxu1 }
 0x328   :  { %v333_v0 = vpop.f32.mrf.mxu3 }
 0x329   :  { %462 = vmatmul.msk.f32.vlgmr.msra.gmra.mxu2 %vm106_vm1, %v333_v0 }
 0x331   :  { %463 = vmatmul.msk.f32.gmra.mxu2 %vm106_vm1, %v359_v1 }
 0x387   :  { %v414_v3 = vpop.f32.mrf.mxu0 }
 0x39c   :  { %v417_v7 = vpop.f32.mrf.mxu3 }
 0x3ac   :  { %v385_v4 = vpop.f32.mrf.mxu2 }
 0x3ad   :  { %v415_v5 = vadd.f32 %v414_v3, %v385_v4 }
 0x3af   :  { %v424_v6 = vadd.f32 %v483_v2, %v415_v5 }
 0x3b1   :  { %426 = vst.msk [vmem:[#allocation8] sm:$0xff] %vm71_vm0, %v424_v6 }
 0x3b4   :  { %v388_v8 = vpop.f32.mrf.mxu2 }
 0x3b5   :  { %v418_v9 = vadd.f32 %v417_v7, %v388_v8 }
 0x3b7   :  { %v425_v10 = vadd.f32 %v483_v2, %v418_v9 }
 0x3b9   :  { %427 = vst.msk [vmem:[#allocation8 + $0x8] sm:$0xff] %vm71_vm0, %v425_v10 }
 0x3ba   :  { %440 = dma.vmem_to_hbm [thread:$0]  %s433_s11, 256, %s435_s14, [#allocation4], %s603_s23, %s603_s23, %s604_s24  }
 0x3bb   :  { %600 = dma.done.wait [#allocation4], 256  }
 0x3bc   :  { %601 = vsyncadd [#allocation4], 4294967040 }
 0x3bd   :  { %445 = vsyncpa [#allocation3], 1 }
 0x3be   :  { %446 = vsyncpa [#allocation6], 1 }
 0x3bf   :  { %447 = vsyncpa [#allocation4], 1 }

</bundles_post_ra>
